<compile_context>
chip_gen: v5e
topology: v5e:2x2
jax: 0.10.0
libtpu: 0.0.40
codegen_flags: <defaults>
</compile_context>

<pallas_src>
import math
import numpy as np
import jax
import jax.numpy as jnp
from jax.experimental import pallas as pl
from jax.experimental.pallas import tpu as pltpu


def _gaussian_1d(size, sigma):
    # Matches torch gaussian_window(): arange(size) - size//2, exp, normalize.
    k = np.arange(size, dtype=np.float32) - size // 2
    k = np.exp(-0.5 / (sigma ** 2) * k ** 2)
    return (k / k.sum()).astype(np.float32)


def _same_conv_matrix(n, g):
    """Banded Toeplitz T with (T @ x)[r] = sum_i g[i] * x_zeropad[r + i - pad].

    The 2-D Gaussian window is g g^T, so F.conv2d(..., padding=ws//2, groups=C)
    is exactly Th @ X @ Tw per plane (g symmetric -> T symmetric, one
    construction serves both sides)."""
    ws = len(g)
    pad = ws // 2
    idx = np.arange(n)
    d = idx[None, :] - idx[:, None] + pad          # T[r, u] = g[u - r + pad]
    T = np.where((d >= 0) & (d < ws), g[np.clip(d, 0, ws - 1)], 0.0)
    return T.astype(np.float32)


def _pick_lp(W, nbc):
    """Planes packed side-by-side along lanes; aim for LW = LP*W % 128 == 0."""
    nbc = max(1, nbc)
    if W >= 128:
        return 1
    if 128 % W == 0:
        return max(1, min(128 // W, nbc))
    k = 1
    while k * W <= 512:
        if (k * W) % 128 == 0 and k <= nbc:
            return k
        k += 1
    return max(1, min(128 // W, nbc))


def make_ssim_loss(window_size=11, sigma=1.5, data_range=1.0):
    """Returns a callable (img1, img2) -> scalar loss = 1 - mean(SSIM map)."""
    g = _gaussian_1d(window_size, sigma)
    C1 = float((0.01 * data_range) ** 2)
    C2 = float((0.03 * data_range) ** 2)

    def ssim_loss(img1, img2):
        assert img1.shape == img2.shape
        B, C, H, W = img1.shape
        NBC = B * C

        # ------------------------------ tiling ------------------------------
        LP = _pick_lp(W, NBC)                       # planes packed along lanes
        LW = LP * W

        # SH <= 128 (v5e MXU contraction depth; never worse on v6e/v7x).
        SUB = max(1, min(max(1, 128 // H), -(-NBC // LP)))
        step = 8 // math.gcd(H, 8)                  # keep SH = SUB*H % 8 == 0
        if SUB >= step:
            SUB = (SUB // step) * step

        def n_groups_for(sub):
            return -(-NBC // (sub * LP))

        # v7x: if all planes land in one group but the work is non-trivial,
        # split so the "parallel" grid axis has >= 2 steps (both TensorCores).
        if (n_groups_for(SUB) == 1 and SUB >= 2 * step
                and NBC * H * W >= (1 << 20)):
            half = max(step, ((SUB // 2) // step) * step)
            if n_groups_for(half) >= 2:
                SUB = half

        SH = SUB * H                                # sublane rows per sub-block
        PB = SUB * LP                               # planes per sub-block
        n_groups = n_groups_for(SUB)

        # Sub-blocks per grid step: amortize ~0.35us/step grid overhead by
        # making the DMA'd block bigger WITHOUT growing Th/Tw.
        sub_bytes = SH * LW * 4
        R = max(1, min(8, int((3 << 20) // (2 * sub_bytes))))   # ~1.5 MiB/in/step
        if n_groups >= 2:
            R = max(1, min(R, n_groups // 2))       # keep G >= 2 when possible
        else:
            R = 1

        def vmem_est(r):
            # 2 inputs x 2 pipeline buffers x block + operators + in-kernel temps.
            return (2 * 2 * r * sub_bytes + SH * SH * 4 + LW * LW * 4
                    + 26 * sub_bytes + 2 * 8 * 128 * 4)

        while R > 1 and vmem_est(R) > (24 << 20):
            R -= 1
        vmem_limit = int(min(64 << 20, max(32 << 20, 2 * vmem_est(R))))

        G = -(-n_groups // R)
        NBCp = G * R * PB
        n_pad = NBCp - NBC                          # zero planes appended

        # -------------------------- operand prep ---------------------------
        x = img1.astype(jnp.float32).reshape(NBC, H, W)
        y = img2.astype(jnp.float32).reshape(NBC, H, W)
        if n_pad:
            x = jnp.pad(x, ((0, n_pad), (0, 0), (0, 0)))
            y = jnp.pad(y, ((0, n_pad), (0, 0), (0, 0)))

        # (NBCp,H,W) -> (G, R, SUB*H, LP*W): plane (s, l) of sub-block (p, r)
        # occupies rows [s*H,(s+1)*H) and cols [l*W,(l+1)*W) of the sub-block.
        def pack(a):
            a = a.reshape(G, R, SUB, LP, H, W)
            a = jnp.transpose(a, (0, 1, 2, 4, 3, 5))
            return a.reshape(G, R, SH, LW)

        xb = pack(x)
        yb = pack(y)

        # Block-diagonal "same-conv" operators keep packed planes independent.
        th = jnp.asarray(np.kron(np.eye(SUB, dtype=np.float32),
                                 _same_conv_matrix(H, g)))      # (SH, SH)
        tw = jnp.asarray(np.kron(np.eye(LP, dtype=np.float32),
                                 _same_conv_matrix(W, g)))      # (LW, LW)

        stacked_ok = (SH % 8 == 0)   # aligned split of the stacked matmul result

        def kernel(x_ref, y_ref, th_ref, tw_ref, out_ref):
            tH = th_ref[...]                        # (SH, SH)
            tW = tw_ref[...]                        # (LW, LW)
            total = jnp.float32(0.0)

            for r in range(R):                      # static unroll, small R
                xv = x_ref[0, r]                    # (SH, LW)
                yv = y_ref[0, r]

                if stacked_ok:
                    # One wide horizontal matmul for all five operands: Tw is
                    # loaded into the MXU weight registers once per sub-block.
                    ops = jnp.concatenate(
                        [xv, yv, xv * xv, yv * yv, xv * yv], axis=0)   # (5*SH, LW)
                    hp = jnp.dot(ops, tW,
                                 preferred_element_type=jnp.float32)   # (5*SH, LW)
                    hp3 = hp.reshape(5, SH, LW)
                    mu1 = jnp.dot(tH, hp3[0], preferred_element_type=jnp.float32)
                    mu2 = jnp.dot(tH, hp3[1], preferred_element_type=jnp.float32)
                    s11 = jnp.dot(tH, hp3[2], preferred_element_type=jnp.float32)
                    s22 = jnp.dot(tH, hp3[3], preferred_element_type=jnp.float32)
                    s12 = jnp.dot(tH, hp3[4], preferred_element_type=jnp.float32)
                else:
                    def blur(a):
                        t = jnp.dot(a, tW, preferred_element_type=jnp.float32)
                        return jnp.dot(tH, t, preferred_element_type=jnp.float32)
                    mu1 = blur(xv)
                    mu2 = blur(yv)
                    s11 = blur(xv * xv)
                    s22 = blur(yv * yv)
                    s12 = blur(xv * yv)

                mu1_sq = mu1 * mu1
                mu2_sq = mu2 * mu2
                mu1_mu2 = mu1 * mu2
                sigma1_sq = s11 - mu1_sq
                sigma2_sq = s22 - mu2_sq
                sigma12 = s12 - mu1_mu2

                num = (2.0 * mu1_mu2 + C1) * (2.0 * sigma12 + C2)
                den = (mu1_sq + mu2_sq + C1) * (sigma1_sq + sigma2_sq + C2)
                total = total + jnp.sum(num / den)

            # One dense (8,128) unmasked store per step; steps are independent.
            out_ref[...] = jnp.zeros(out_ref.shape, jnp.float32) + total

        partials = pl.pallas_call(
            kernel,
            out_shape=jax.ShapeDtypeStruct((G, 8, 128), jnp.float32),
            grid_spec=pltpu.PrefetchScalarGridSpec(
                num_scalar_prefetch=0,
                grid=(G,),
                in_specs=[
                    pl.BlockSpec((1, R, SH, LW), lambda p: (p, 0, 0, 0)),
                    pl.BlockSpec((1, R, SH, LW), lambda p: (p, 0, 0, 0)),
                    pl.BlockSpec((SH, SH), lambda p: (0, 0)),   # constant block
                    pl.BlockSpec((LW, LW), lambda p: (0, 0)),   # constant block
                ],
                out_specs=pl.BlockSpec((1, 8, 128), lambda p: (p, 0, 0)),
            ),
            compiler_params=pltpu.CompilerParams(
                dimension_semantics=("parallel",),
                vmem_limit_bytes=vmem_limit),
        )(xb, yb, th, tw)

        # Appended zero planes yield ssim == 1.0 exactly (num == den == C1*C2;
        # block-diagonal operators prevent cross-plane mixing), so their
        # contribution is exactly n_pad * H * W; subtract it.
        total = jnp.sum(partials[:, 0, 0]) - jnp.float32(n_pad * H * W)
        mean_ssim = total / jnp.float32(NBC * H * W)
        return jnp.float32(1.0) - mean_ssim

    return ssim_loss


def ssim_loss_ref(img1, img2, window_size=11, sigma=1.5, data_range=1.0):
    """Pure-JAX reference mirroring the PyTorch code (depthwise conv2d)."""
    Cc = img1.shape[1]
    g = jnp.asarray(_gaussian_1d(window_size, sigma))
    w2 = jnp.outer(g, g)
    window = jnp.broadcast_to(w2, (Cc, 1, window_size, window_size))
    pad = window_size // 2
    C1 = (0.01 * data_range) ** 2
    C2 = (0.03 * data_range) ** 2

    def conv(a):
        return jax.lax.conv_general_dilated(
            a.astype(jnp.float32), window, (1, 1), [(pad, pad), (pad, pad)],
            dimension_numbers=("NCHW", "OIHW", "NCHW"),
            feature_group_count=Cc, precision=jax.lax.Precision.HIGHEST)

    mu1 = conv(img1)
    mu2 = conv(img2)
    mu1_sq = mu1 ** 2
    mu2_sq = mu2 ** 2
    mu1_mu2 = mu1 * mu2
    sigma1_sq = conv(img1 * img1) - mu1_sq
    sigma2_sq = conv(img2 * img2) - mu2_sq
    sigma12 = conv(img1 * img2) - mu1_mu2
    ssim_map = ((2 * mu1_mu2 + C1) * (2 * sigma12 + C2) /
                ((mu1_sq + mu2_sq + C1) * (sigma1_sq + sigma2_sq + C2)))
    return 1.0 - ssim_map.mean()


if __name__ == "__main__":
    ssim_loss = make_ssim_loss(window_size=11, sigma=1.5, data_range=1.0)
    key = jax.random.PRNGKey(0)
    shapes = [
        (2, 4, 16, 16),   # spec shape: 8 planes packed into one (16, 128) sub-block
        (3, 5, 32, 32),   # exercises the appended-zero-plane correction (15 -> 16)
        (8, 8, 32, 32),   # multi-step "parallel" grid (G=2) with R=2 sub-blocks/step
        (4, 3, 64, 48),   # W=48: LP=8 -> LW=384 (lane-dense non-128-divisible width)
    ]
    for shp in shapes:
        key, k1, k2 = jax.random.split(key, 3)
        img1 = jax.random.uniform(k1, shp, dtype=jnp.float32)
        img2 = jax.random.uniform(k2, shp, dtype=jnp.float32)
        loss = jax.block_until_ready(ssim_loss(img1, img2))
        ref = jax.block_until_ready(ssim_loss_ref(img1, img2))
        np.testing.assert_allclose(np.asarray(loss), np.asarray(ref),
                                   rtol=1e-3, atol=1e-5)
    print("KERNEL_OK")
</pallas_src>

<mosaic_0001>
module attributes {stable_mosaic.version = 11 : i64} {
  func.func @kernel(%arg0: i32, %arg1: memref<1x1x16x128xf32, #tpu.memory_space<vmem>>, %arg2: memref<1x1x16x128xf32, #tpu.memory_space<vmem>>, %arg3: memref<16x16xf32, #tpu.memory_space<vmem>>, %arg4: memref<128x128xf32, #tpu.memory_space<vmem>>, %arg5: memref<1x8x128xf32, #tpu.memory_space<vmem>>) attributes {dimension_semantics = [#tpu.dimension_semantics<parallel>], iteration_bounds = array<i64: 1>, scalar_prefetch = 0 : i64, scratch_operands = 0 : i64, tpu.core_type = #tpu.core_type<tc>, window_params = [{transform_indices = @transform_0, window_bounds = array<i64: 1, 1, 16, 128>}, {transform_indices = @transform_1, window_bounds = array<i64: 1, 1, 16, 128>}, {pipeline_mode = #tpu.pipeline_mode<synchronous>, transform_indices = @transform_2, window_bounds = array<i64: 16, 16>}, {pipeline_mode = #tpu.pipeline_mode<synchronous>, transform_indices = @transform_3, window_bounds = array<i64: 128, 128>}, {transform_indices = @transform_4, window_bounds = array<i64: 1, 8, 128>}]} {
    %c0 = arith.constant 0 : index
    %c0_0 = arith.constant 0 : index
    %0 = vector.load %arg3[%c0, %c0_0] : memref<16x16xf32, #tpu.memory_space<vmem>>, vector<16x16xf32>
    %c0_1 = arith.constant 0 : index
    %c0_2 = arith.constant 0 : index
    %1 = vector.load %arg4[%c0_1, %c0_2] : memref<128x128xf32, #tpu.memory_space<vmem>>, vector<128x128xf32>
    %c0_3 = arith.constant 0 : index
    %c0_4 = arith.constant 0 : index
    %c0_5 = arith.constant 0 : index
    %c0_6 = arith.constant 0 : index
    %2 = vector.load %arg1[%c0_3, %c0_4, %c0_5, %c0_6] : memref<1x1x16x128xf32, #tpu.memory_space<vmem>>, vector<1x1x16x128xf32>
    %3 = vector.shape_cast %2 : vector<1x1x16x128xf32> to vector<16x128xf32>
    %c0_7 = arith.constant 0 : index
    %c0_8 = arith.constant 0 : index
    %c0_9 = arith.constant 0 : index
    %c0_10 = arith.constant 0 : index
    %4 = vector.load %arg2[%c0_7, %c0_8, %c0_9, %c0_10] : memref<1x1x16x128xf32, #tpu.memory_space<vmem>>, vector<1x1x16x128xf32>
    %5 = vector.shape_cast %4 : vector<1x1x16x128xf32> to vector<16x128xf32>
    %6 = arith.mulf %3, %3 : vector<16x128xf32>
    %7 = arith.mulf %5, %5 : vector<16x128xf32>
    %8 = arith.mulf %3, %5 : vector<16x128xf32>
    %9 = tpu.concatenate %3, %5, %6, %7, %8 in 0 : vector<16x128xf32>, vector<16x128xf32>, vector<16x128xf32>, vector<16x128xf32>, vector<16x128xf32> -> vector<80x128xf32>
    %cst = arith.constant dense<0.000000e+00> : vector<80x128xf32>
    %10 = tpu.matmul %9, %1, %cst {dimension_numbers = #tpu.dot_dimension_numbers<[1], [0], [0], [1], [0, 0, 1, 1], [], []>} : vector<80x128xf32>, vector<128x128xf32>, vector<80x128xf32> -> vector<80x128xf32>
    %11 = vector.shape_cast %10 : vector<80x128xf32> to vector<5x16x128xf32>
    %12 = vector.extract_strided_slice %11 {offsets = [0, 0, 0], sizes = [1, 16, 128], strides = [1, 1, 1]} : vector<5x16x128xf32> to vector<1x16x128xf32>
    %13 = vector.shape_cast %12 : vector<1x16x128xf32> to vector<16x128xf32>
    %cst_11 = arith.constant dense<0.000000e+00> : vector<16x128xf32>
    %14 = tpu.matmul %0, %13, %cst_11 {dimension_numbers = #tpu.dot_dimension_numbers<[1], [0], [0], [1], [0, 0, 1, 1], [], []>} : vector<16x16xf32>, vector<16x128xf32>, vector<16x128xf32> -> vector<16x128xf32>
    %15 = vector.extract_strided_slice %11 {offsets = [1, 0, 0], sizes = [1, 16, 128], strides = [1, 1, 1]} : vector<5x16x128xf32> to vector<1x16x128xf32>
    %16 = vector.shape_cast %15 : vector<1x16x128xf32> to vector<16x128xf32>
    %cst_12 = arith.constant dense<0.000000e+00> : vector<16x128xf32>
    %17 = tpu.matmul %0, %16, %cst_12 {dimension_numbers = #tpu.dot_dimension_numbers<[1], [0], [0], [1], [0, 0, 1, 1], [], []>} : vector<16x16xf32>, vector<16x128xf32>, vector<16x128xf32> -> vector<16x128xf32>
    %18 = vector.extract_strided_slice %11 {offsets = [2, 0, 0], sizes = [1, 16, 128], strides = [1, 1, 1]} : vector<5x16x128xf32> to vector<1x16x128xf32>
    %19 = vector.shape_cast %18 : vector<1x16x128xf32> to vector<16x128xf32>
    %cst_13 = arith.constant dense<0.000000e+00> : vector<16x128xf32>
    %20 = tpu.matmul %0, %19, %cst_13 {dimension_numbers = #tpu.dot_dimension_numbers<[1], [0], [0], [1], [0, 0, 1, 1], [], []>} : vector<16x16xf32>, vector<16x128xf32>, vector<16x128xf32> -> vector<16x128xf32>
    %21 = vector.extract_strided_slice %11 {offsets = [3, 0, 0], sizes = [1, 16, 128], strides = [1, 1, 1]} : vector<5x16x128xf32> to vector<1x16x128xf32>
    %22 = vector.shape_cast %21 : vector<1x16x128xf32> to vector<16x128xf32>
    %cst_14 = arith.constant dense<0.000000e+00> : vector<16x128xf32>
    %23 = tpu.matmul %0, %22, %cst_14 {dimension_numbers = #tpu.dot_dimension_numbers<[1], [0], [0], [1], [0, 0, 1, 1], [], []>} : vector<16x16xf32>, vector<16x128xf32>, vector<16x128xf32> -> vector<16x128xf32>
    %24 = vector.extract_strided_slice %11 {offsets = [4, 0, 0], sizes = [1, 16, 128], strides = [1, 1, 1]} : vector<5x16x128xf32> to vector<1x16x128xf32>
    %25 = vector.shape_cast %24 : vector<1x16x128xf32> to vector<16x128xf32>
    %cst_15 = arith.constant dense<0.000000e+00> : vector<16x128xf32>
    %26 = tpu.matmul %0, %25, %cst_15 {dimension_numbers = #tpu.dot_dimension_numbers<[1], [0], [0], [1], [0, 0, 1, 1], [], []>} : vector<16x16xf32>, vector<16x128xf32>, vector<16x128xf32> -> vector<16x128xf32>
    %27 = arith.mulf %14, %14 : vector<16x128xf32>
    %28 = arith.mulf %17, %17 : vector<16x128xf32>
    %29 = arith.mulf %14, %17 : vector<16x128xf32>
    %30 = arith.subf %20, %27 : vector<16x128xf32>
    %31 = arith.subf %23, %28 : vector<16x128xf32>
    %32 = arith.subf %26, %29 : vector<16x128xf32>
    %cst_16 = arith.constant 2.000000e+00 : f32
    %33 = vector.broadcast %cst_16 : f32 to vector<16x128xf32>
    %34 = arith.mulf %33, %29 : vector<16x128xf32>
    %cst_17 = arith.constant 9.99999974E-5 : f32
    %35 = vector.broadcast %cst_17 : f32 to vector<16x128xf32>
    %36 = arith.addf %34, %35 : vector<16x128xf32>
    %cst_18 = arith.constant 2.000000e+00 : f32
    %37 = vector.broadcast %cst_18 : f32 to vector<16x128xf32>
    %38 = arith.mulf %37, %32 : vector<16x128xf32>
    %cst_19 = arith.constant 8.99999984E-4 : f32
    %39 = vector.broadcast %cst_19 : f32 to vector<16x128xf32>
    %40 = arith.addf %38, %39 : vector<16x128xf32>
    %41 = arith.mulf %36, %40 : vector<16x128xf32>
    %42 = arith.addf %27, %28 : vector<16x128xf32>
    %cst_20 = arith.constant 9.99999974E-5 : f32
    %43 = vector.broadcast %cst_20 : f32 to vector<16x128xf32>
    %44 = arith.addf %42, %43 : vector<16x128xf32>
    %45 = arith.addf %30, %31 : vector<16x128xf32>
    %cst_21 = arith.constant 8.99999984E-4 : f32
    %46 = vector.broadcast %cst_21 : f32 to vector<16x128xf32>
    %47 = arith.addf %45, %46 : vector<16x128xf32>
    %48 = arith.mulf %44, %47 : vector<16x128xf32>
    %49 = arith.divf %41, %48 : vector<16x128xf32>
    %50 = vector.shape_cast %49 : vector<16x128xf32> to vector<1x16x128xf32>
    %cst_22 = arith.constant dense<0.000000e+00> : vector<1xf32>
    %51 = vector.multi_reduction <add>, %50, %cst_22 [1, 2] : vector<1x16x128xf32> to vector<1xf32>
    %52 = vector.shape_cast %51 : vector<1xf32> to vector<1x1x1xf32>
    %53 = vector.extract %52[0, 0, 0] : f32 from vector<1x1x1xf32>
    %cst_23 = arith.constant 0.000000e+00 : f32
    %54 = arith.addf %cst_23, %53 : f32
    %cst_24 = arith.constant 0.000000e+00 : f32
    %55 = vector.broadcast %cst_24 : f32 to vector<1x8x128xf32>
    %56 = vector.broadcast %54 : f32 to vector<1x8x128xf32>
    %57 = arith.addf %55, %56 : vector<1x8x128xf32>
    %c0_25 = arith.constant 0 : index
    %c0_26 = arith.constant 0 : index
    %c0_27 = arith.constant 0 : index
    %58 = vector.load %arg5[%c0_25, %c0_26, %c0_27] : memref<1x8x128xf32, #tpu.memory_space<vmem>>, vector<1x8x128xf32>
    tpu.vector_store %arg5[%c0_25, %c0_26, %c0_27], %57 {strides = array<i32>} : memref<1x8x128xf32, #tpu.memory_space<vmem>>, vector<1x8x128xf32>,
    return
  }
  func.func @transform_0(%arg0: i32) -> (i32, i32, i32, i32) {
    %c0_i32 = arith.constant 0 : i32
    %c0_i32_0 = arith.constant 0 : i32
    %c0_i32_1 = arith.constant 0 : i32
    %c0_i32_2 = arith.constant 0 : i32
    return %arg0, %c0_i32, %c0_i32_0, %c0_i32_1 : i32, i32, i32, i32
  }
  func.func @transform_1(%arg0: i32) -> (i32, i32, i32, i32) {
    %c0_i32 = arith.constant 0 : i32
    %c0_i32_0 = arith.constant 0 : i32
    %c0_i32_1 = arith.constant 0 : i32
    %c0_i32_2 = arith.constant 0 : i32
    return %arg0, %c0_i32, %c0_i32_0, %c0_i32_1 : i32, i32, i32, i32
  }
  func.func @transform_2(%arg0: i32) -> (i32, i32) {
    %c0_i32 = arith.constant 0 : i32
    %c0_i32_0 = arith.constant 0 : i32
    %c0_i32_1 = arith.constant 0 : i32
    return %c0_i32, %c0_i32_0 : i32, i32
  }
  func.func @transform_3(%arg0: i32) -> (i32, i32) {
    %c0_i32 = arith.constant 0 : i32
    %c0_i32_0 = arith.constant 0 : i32
    %c0_i32_1 = arith.constant 0 : i32
    return %c0_i32, %c0_i32_0 : i32, i32
  }
  func.func @transform_4(%arg0: i32) -> (i32, i32, i32) {
    %c0_i32 = arith.constant 0 : i32
    %c0_i32_0 = arith.constant 0 : i32
    %c0_i32_1 = arith.constant 0 : i32
    return %arg0, %c0_i32, %c0_i32_0 : i32, i32, i32
  }
}

</mosaic_0001>

<bundles_post_ra>
// kernel: tpu_custom_call.1
= control target key start
LH: loop header
LB: loop body
LE: loop exit
PB: predicated region body
PF: predicated region fallthrough
CT: control target
= control target key end

     0   :  { %9 = vsyncpa [#allocation3], 0  ;;  %s615_s0 = inlined_call_operand.hbm [shape: f32[1,1,16,128], index: 0, kind: input, shape index: {}]   ;;  %s616_s1 = inlined_call_operand.hbm [shape: f32[1,1,16,128], index: 1, kind: input, shape index: {}]   ;;  %s617_s2 = inlined_call_operand.hbm [shape: f32[16,16], index: 2, kind: input, shape index: {}]   ;;  %s618_s3 = inlined_call_operand.hbm [shape: f32[128,128], index: 3, kind: input, shape index: {}]   ;;  %s619_s4 = inlined_call_operand.hbm [shape: f32[1,8,128], index: 4, kind: output, shape index: {}]  }
   0x1   :  { %10 = vsyncpa [#allocation6], 0 }
   0x2   :  { %11 = vsyncpa [#allocation9], 0 }
   0x3   :  { %12 = vsyncpa [#allocation4], 0  ;;  %s30_s17 = sshll.u32 %s616_s1, 4  ;;  %s558_s18 = smov [#allocation5]   ;;  %s31_s17 = int_to_ptr.hbm [resolvable:$true] %s30_s17 }
   0x4   :  { %s32_s19 = sshll.u32 %s558_s18, 4  ;;  %s17_s22 = sshll.u32 %s615_s0, 4  ;;  %s33_s19 = int_to_ptr.vmem [resolvable:$true] %s32_s19  ;;  %s18_s22 = int_to_ptr.hbm [resolvable:$true] %s17_s22 }
   0x5   :  { %s559_s23 = smov 128   ;;  %s560_s24 = smov 8  }
   0x6   :  { %38 = dma.hbm_to_vmem [thread:$0]  %s31_s17, 256, %s33_s19, [#allocation6], %s559_s23, %s559_s23, %s560_s24  }
   0x7   :  { %s561_s25 = smov [#allocation2]   ;;  %s43_s29 = sshll.u32 %s617_s2, 4  ;;  %s44_s29 = int_to_ptr.hbm [resolvable:$true] %s43_s29 }
   0x8   :  { %s19_s26 = sshll.u32 %s561_s25, 4  ;;  %s56_s5 = sshll.u32 %s618_s3, 4  ;;  %s20_s26 = int_to_ptr.vmem [resolvable:$true] %s19_s26  ;;  %s57_s5 = int_to_ptr.hbm [resolvable:$true] %s56_s5 }
   0x9   :  { %25 = dma.hbm_to_vmem [thread:$0]  %s18_s22, 256, %s20_s26, [#allocation3], %s559_s23, %s559_s23, %s560_s24  }
   0xa   :  { %s562_s6 = smov [#allocation7]   ;;  %s563_s0 = smov [#allocation8]  }
   0xb   :  { %s45_s7 = sshll.u32 %s562_s6, 4  ;;  %s58_s8 = sshll.u32 %s563_s0, 4  ;;  %s46_s7 = int_to_ptr.vmem [resolvable:$true] %s45_s7  ;;  %s59_s8 = int_to_ptr.vmem [resolvable:$true] %s58_s8 }
   0xc   :  { %51 = dma.hbm_to_vmem [thread:$0]  %s44_s29, 256, %s46_s7, [#allocation6], %s559_s23, %s559_s23, %s560_s24  }
   0xd   :  { %64 = dma.hbm_to_vmem [thread:$0]  %s57_s5, 2048, %s59_s8, [#allocation9], %s559_s23, %s559_s23, %s560_s24  }
   0xe   :  { %550 = dma.done.wait [#allocation3], 256  }
   0xf   :  { %551 = vsyncadd [#allocation3], 4294967040 }
  0x10   :  { %552 = dma.done.wait [#allocation6], 512  }
  0x11   :  { %553 = vsyncadd [#allocation6], 4294966784 }
  0x12   :  { %554 = dma.done.wait [#allocation9], 2048  }
  0x13   :  { %555 = vsyncadd [#allocation9], 4294965248  ;;  %v98_v0 = vld [vmem:[#allocation8 + $0x78] sm:$0xff]  ;;  %v97_v1 = vld [vmem:[#allocation8 + $0x70] sm:$0xff]  ;;  %vm156_vm0 = vcmask 130048   ;;  %s564_s2 = smov [#allocation10]  }
  0x14   :  { %109 = vmatpush.msra.mxu0 %v98_v0  ;;  %384 = vmatpush.msra.mxu3 %v98_v0  ;;  %v96_v2 = vld [vmem:[#allocation8 + $0x68] sm:$0xff]  ;;  %v95_v3 = vld [vmem:[#allocation8 + $0x60] sm:$0xff]  ;;  %v94_v4 = vld [vmem:[#allocation8 + $0x58] sm:$0xff]  ;;  %s359_s3 = sshll.u32 %s564_s2, 4  ;;  %s361_s11 = sshll.u32 %s619_s4, 4  ;;  %s360_s3 = int_to_ptr.vmem [resolvable:$true] %s359_s3  ;;  %s362_s11 = int_to_ptr.hbm [resolvable:$true] %s361_s11 }
  0x15   :  { %383 = vmatpush.msra.mxu2 %v98_v0  ;;  %v93_v5 = vld [vmem:[#allocation8 + $0x50] sm:$0xff]  ;;  %v92_v6 = vld [vmem:[#allocation8 + $0x48] sm:$0xff]  ;;  %v91_v7 = vld [vmem:[#allocation8 + $0x40] sm:$0xff] }
  0x16   :  { %110 = vmatpush.msra.mxu0 %v97_v1  ;;  %386 = vmatpush.msra.mxu3 %v97_v1  ;;  %v90_v8 = vld [vmem:[#allocation8 + $0x38] sm:$0xff]  ;;  %v89_v9 = vld [vmem:[#allocation8 + $0x30] sm:$0xff]  ;;  %v88_v10 = vld [vmem:[#allocation8 + $0x28] sm:$0xff] }
  0x17   :  { %385 = vmatpush.msra.mxu2 %v97_v1  ;;  %v87_v11 = vld [vmem:[#allocation8 + $0x20] sm:$0xff]  ;;  %v86_v12 = vld [vmem:[#allocation8 + $0x18] sm:$0xff]  ;;  %v85_v13 = vld [vmem:[#allocation8 + $0x10] sm:$0xff] }
  0x18   :  { %111 = vmatpush.msra.mxu0 %v96_v2  ;;  %388 = vmatpush.msra.mxu3 %v96_v2  ;;  %v100_v14 = vld [vmem:[#allocation2 + $0x8] sm:$0xff]  ;;  %v84_v15 = vld [vmem:[#allocation8 + $0x8] sm:$0xff]  ;;  %v83_v16 = vld [vmem:[#allocation8] sm:$0xff] }
  0x19   :  { %387 = vmatpush.msra.mxu2 %v96_v2  ;;  %v104_v17 = vmul.f32 %v100_v14, %v100_v14  ;;  %v99_v18 = vld [vmem:[#allocation2] sm:$0xff]  ;;  %v101_v20 = vld [vmem:[#allocation5] sm:$0xff]  ;;  %v102_v22 = vld [vmem:[#allocation5 + $0x8] sm:$0xff] }
  0x1a   :  { %112 = vmatpush.msra.mxu0 %v95_v3  ;;  %390 = vmatpush.msra.mxu3 %v95_v3  ;;  %v103_v19 = vmul.f32 %v99_v18, %v99_v18  ;;  %v105_v21 = vmul.f32 %v101_v20, %v101_v20  ;;  %v106_v23 = vmul.f32 %v102_v22, %v102_v22  ;;  %v81_v29 = vld [vmem:[#allocation7] sm:$0xff]  ;;  %v82_v32 = vld [vmem:[#allocation7 + $0x8] sm:$0xff] }
  0x1b   :  { %389 = vmatpush.msra.mxu2 %v95_v3  ;;  %v107_v24 = vmul.f32 %v101_v20, %v99_v18  ;;  %v108_v25 = vmul.f32 %v102_v22, %v100_v14 }
  0x1c   :  { %113 = vmatpush.msra.mxu0 %v94_v4  ;;  %392 = vmatpush.msra.mxu3 %v94_v4 }
  0x1d   :  { %391 = vmatpush.msra.mxu2 %v94_v4 }
  0x1e   :  { %114 = vmatpush.msra.mxu0 %v93_v5  ;;  %394 = vmatpush.msra.mxu3 %v93_v5 }
  0x1f   :  { %393 = vmatpush.msra.mxu2 %v93_v5 }
  0x20   :  { %115 = vmatpush.msra.mxu0 %v92_v6  ;;  %396 = vmatpush.msra.mxu3 %v92_v6 }
  0x21   :  { %395 = vmatpush.msra.mxu2 %v92_v6 }
  0x22   :  { %116 = vmatpush.msra.mxu0 %v91_v7  ;;  %398 = vmatpush.msra.mxu3 %v91_v7 }
  0x23   :  { %397 = vmatpush.msra.mxu2 %v91_v7 }
  0x24   :  { %117 = vmatpush.msra.mxu0 %v90_v8  ;;  %400 = vmatpush.msra.mxu3 %v90_v8 }
  0x25   :  { %399 = vmatpush.msra.mxu2 %v90_v8 }
  0x26   :  { %118 = vmatpush.msra.mxu0 %v89_v9  ;;  %402 = vmatpush.msra.mxu3 %v89_v9 }
  0x27   :  { %401 = vmatpush.msra.mxu2 %v89_v9 }
  0x28   :  { %119 = vmatpush.msra.mxu0 %v88_v10  ;;  %404 = vmatpush.msra.mxu3 %v88_v10 }
  0x29   :  { %403 = vmatpush.msra.mxu2 %v88_v10 }
  0x2a   :  { %120 = vmatpush.msra.mxu0 %v87_v11  ;;  %406 = vmatpush.msra.mxu3 %v87_v11 }
  0x2b   :  { %405 = vmatpush.msra.mxu2 %v87_v11 }
  0x2c   :  { %121 = vmatpush.msra.mxu0 %v86_v12  ;;  %408 = vmatpush.msra.mxu3 %v86_v12 }
  0x2d   :  { %407 = vmatpush.msra.mxu2 %v86_v12 }
  0x2e   :  { %122 = vmatpush.msra.mxu0 %v85_v13  ;;  %410 = vmatpush.msra.mxu3 %v85_v13 }
  0x2f   :  { %409 = vmatpush.msra.mxu2 %v85_v13 }
  0x30   :  { %123 = vmatpush.msra.mxu0 %v84_v15  ;;  %412 = vmatpush.msra.mxu3 %v84_v15 }
  0x31   :  { %411 = vmatpush.msra.mxu2 %v84_v15 }
  0x32   :  { %124 = vmatpush.msra.mxu0 %v83_v16  ;;  %414 = vmatpush.msra.mxu3 %v83_v16 }
  0x33   :  { %125 = vmatmul.f32.vlgmr.msra.gmra.mxu0 %v99_v18  ;;  %140 = vmatmul.f32.vlgmr.msra.gmra.mxu3 %v104_v17 }
  0x34   :  { %413 = vmatpush.msra.mxu2 %v83_v16 }
  0x35   :  { %137 = vmatmul.f32.vlgmr.msra.gmra.mxu2 %v103_v19 }
  0x3b   :  { %128 = vmatmul.f32.gmra.mxu0 %v100_v14  ;;  %143 = vmatmul.f32.gmra.mxu3 %v105_v21 }
  0x43   :  { %131 = vmatmul.f32.gmra.mxu0 %v101_v20  ;;  %146 = vmatmul.f32.gmra.mxu3 %v106_v23 }
  0x4b   :  { %134 = vmatmul.f32.gmra.mxu0 %v102_v22  ;;  %149 = vmatmul.f32.gmra.mxu3 %v107_v24 }
  0x53   :  { %152 = vmatmul.f32.gmra.mxu3 %v108_v25 }
  0xb0   :  { %v126_v26 = vpop.f32.mrf.mxu0 }
  0xb6   :  { %v141_v27 = vpop.f32.mrf.mxu3 }
  0xb8   :  { %v129_v28 = vpop.f32.mrf.mxu0  ;;  %v138_v35 = vpop.f32.mrf.mxu2 }
  0xb9   :  { %177 = vmatpush.msra.mxu1 %v129_v28 }
  0xbb   :  { %178 = vmatpush.msra.mxu1 %v126_v26 }
  0xbc   :  { %373 = vmatmul.msk.f32.vlgmr.msra.gmra.mxu1 %vm156_vm0, %v81_v29 }
  0xbe   :  { %v144_v30 = vpop.f32.mrf.mxu3 }
  0xc0   :  { %v132_v31 = vpop.f32.mrf.mxu0 }
  0xc4   :  { %374 = vmatmul.msk.f32.gmra.mxu1 %vm156_vm0, %v82_v32 }
  0xc6   :  { %v147_v33 = vpop.f32.mrf.mxu3 }
  0xc8   :  { %v135_v34 = vpop.f32.mrf.mxu0 }
  0xc9   :  { %200 = vmatpush.msrb.mxu1 %v135_v34  ;;  %415 = vmatpush.msrb.mxu2 %v135_v34 }
  0xcb   :  { %201 = vmatpush.msrb.mxu1 %v132_v31  ;;  %416 = vmatpush.msrb.mxu2 %v132_v31 }
  0xcc   :  { %375 = vmatmul.msk.f32.vlgmr.msrb.gmra.mxu1 %vm156_vm0, %v81_v29  ;;  %376 = vmatmul.msk.f32.vlgmr.msrb.gmra.mxu2 %vm156_vm0, %v82_v32 }
  0xcd   :  { %223 = vmatpush.msra.mxu1 %v141_v27 }
  0xce   :  { %v150_v36 = vpop.f32.mrf.mxu3 }
  0xcf   :  { %224 = vmatpush.msra.mxu1 %v138_v35 }
  0xd1   :  { %246 = vmatpush.msrb.mxu1 %v147_v33 }
  0xd3   :  { %247 = vmatpush.msrb.mxu1 %v144_v30 }
  0xd4   :  { %377 = vmatmul.msk.f32.vlgmr.msra.gmra.mxu1 %vm156_vm0, %v81_v29 }
  0xd6   :  { %v153_v37 = vpop.f32.mrf.mxu3 }
  0xd7   :  { %269 = vmatpush.msra.mxu2 %v153_v37 }
  0xd9   :  { %270 = vmatpush.msra.mxu2 %v150_v36 }
  0xda   :  { %381 = vmatmul.msk.f32.vlgmr.msra.gmra.mxu2 %vm156_vm0, %v81_v29 }
  0xdc   :  { %378 = vmatmul.msk.f32.gmra.mxu1 %vm156_vm0, %v82_v32 }
  0xe2   :  { %382 = vmatmul.msk.f32.gmra.mxu2 %vm156_vm0, %v82_v32 }
  0xe4   :  { %379 = vmatmul.msk.f32.vlgmr.msrb.gmra.mxu1 %vm156_vm0, %v81_v29 }
  0xec   :  { %380 = vmatmul.msk.f32.gmra.mxu1 %vm156_vm0, %v82_v32 }
 0x139   :  { %v180_v38 = vpop.f32.mrf.mxu1 }
 0x13a   :  { %v278_v45 = vmul.f32 %v180_v38, %v180_v38 }
 0x141   :  { %v183_v39 = vpop.f32.mrf.mxu1 }
 0x142   :  { %v279_v55 = vmul.f32 %v183_v39, %v183_v39 }
 0x149   :  { %v203_v40 = vpop.f32.mrf.mxu1 }
 0x14a   :  { %v280_v43 = vmul.f32 %v203_v40, %v203_v40  ;;  %v282_v4 = vmul.f32 %v203_v40, %v180_v38 }
 0x14c   :  { %v300_v47 = vadd.f32 %v280_v43, %v278_v45  ;;  %v290_v15 = vmul.f32 2.0, %v282_v4 }
 0x14e   :  { %v302_v51 = vadd.f32 0.0001, %v300_v47  ;;  %v292_v26 = vadd.f32 0.0001, %v290_v15 }
 0x14f   :  { %v206_v44 = vpop.f32.mrf.mxu2 }
 0x150   :  { %v281_v52 = vmul.f32 %v206_v44, %v206_v44  ;;  %v283_v5 = vmul.f32 %v206_v44, %v183_v39 }
 0x151   :  { %v226_v41 = vpop.f32.mrf.mxu1 }
 0x152   :  { %v284_v48 = vsub.f32 %v226_v41, %v278_v45  ;;  %v301_v58 = vadd.f32 %v281_v52, %v279_v55  ;;  %v291_v17 = vmul.f32 2.0, %v283_v5 }
 0x154   :  { %v303_v62 = vadd.f32 0.0001, %v301_v58  ;;  %v293_v28 = vadd.f32 0.0001, %v291_v17 }
 0x159   :  { %v229_v42 = vpop.f32.mrf.mxu1 }
 0x15a   :  { %v285_v59 = vsub.f32 %v229_v42, %v279_v55 }
 0x15d   :  { %v272_v54 = vpop.f32.mrf.mxu2 }
 0x15e   :  { %v288_v7 = vsub.f32 %v272_v54, %v282_v4 }
 0x160   :  { %v294_v11 = vmul.f32 2.0, %v288_v7 }
 0x161   :  { %v249_v46 = vpop.f32.mrf.mxu1 }
 0x162   :  { %v286_v49 = vsub.f32 %v249_v46, %v280_v43  ;;  %v296_v20 = vadd.f32 0.0009, %v294_v11 }
 0x164   :  { %v304_v50 = vadd.f32 %v286_v49, %v284_v48  ;;  %v298_v32 = vmul.f32 %v296_v20, %v292_v26 }
 0x165   :  { %v275_v2 = vpop.f32.mrf.mxu2 }
 0x166   :  { %v306_v53 = vadd.f32 0.0009, %v304_v50  ;;  %v289_v8 = vsub.f32 %v275_v2, %v283_v5 }
 0x168   :  { %v308_v56 = vmul.f32 %v306_v53, %v302_v51  ;;  %v295_v12 = vmul.f32 2.0, %v289_v8 }
 0x169   :  { %v252_v57 = vpop.f32.mrf.mxu1 }
 0x16a   :  { %426 = vrcp.f32 %v308_v56  ;;  %v287_v60 = vsub.f32 %v252_v57, %v281_v52  ;;  %v321_v16 = vand.u32 2147483648, %v308_v56  ;;  %vm315_vm2 = vweird.f32 %v308_v56 }
 0x16b   :  { %v319_v18 = vand.u32 2147483647, %v308_v56  ;;  %v297_v21 = vadd.f32 0.0009, %v295_v12 }
 0x16c   :  { %v305_v61 = vadd.f32 %v287_v60, %v285_v59  ;;  %v322_v27 = vor.u32 1.1754944e-38, %v321_v16 }
 0x16d   :  { %vm320_vm5 = vcmp.eq.f32.partialorder %v319_v18, 8.507059e+37  ;;  %v299_v33 = vmul.f32 %v297_v21, %v293_v28 }
 0x16e   :  { %v307_v63 = vadd.f32 0.0009, %v305_v61 }
 0x170   :  { %v427_v0 = vpop.eup %426  ;;  %v309_v1 = vmul.f32 %v307_v63, %v303_v62 }
 0x171   :  { %v311_v3 = vmul.f32 %v427_v0, %v308_v56  ;;  %vm316_vm1 = vweird.f32 %v427_v0 }
 0x172   :  { %428 = vrcp.f32 %v309_v1  ;;  %vm317_vm3 = vmor %vm315_vm2, %vm316_vm1  ;;  %v336_v22 = vand.u32 2147483648, %v309_v1  ;;  %v334_v25 = vand.u32 2147483647, %v309_v1  ;;  %vm330_vm6 = vweird.f32 %v309_v1 }
 0x173   :  { %v312_v6 = vsub.f32 1.0, %v311_v3 }
 0x174   :  { %v337_v31 = vor.u32 1.1754944e-38, %v336_v22  ;;  %vm335_vm8 = vcmp.eq.f32.partialorder %v334_v25, 8.507059e+37 }
 0x175   :  { %v313_v9 = vmul.f32 %v427_v0, %v312_v6 }
 0x177   :  { %v314_v13 = vadd.f32 %v427_v0, %v313_v9 }
 0x178   :  { %v429_v10 = vpop.eup %428 }
 0x179   :  { %v326_v14 = vmul.f32 %v429_v10, %v309_v1  ;;  %v318_v23 = vsel %vm317_vm3, %v427_v0, %v314_v13  ;;  %vm331_vm4 = vweird.f32 %v429_v10 }
 0x17a   :  { %v323_v30 = vsel %vm320_vm5, %v322_v27, %v318_v23  ;;  %vm332_vm7 = vmor %vm330_vm6, %vm331_vm4 }
 0x17b   :  { %v327_v19 = vsub.f32 1.0, %v326_v14  ;;  %v324_v36 = vmul.f32 %v323_v30, %v298_v32 }
 0x17d   :  { %v328_v24 = vmul.f32 %v429_v10, %v327_v19 }
 0x17f   :  { %v329_v29 = vadd.f32 %v429_v10, %v328_v24 }
 0x181   :  { %v333_v34 = vsel %vm332_vm7, %v429_v10, %v329_v29 }
 0x182   :  { %v338_v35 = vsel %vm335_vm8, %v337_v31, %v333_v34 }
 0x183   :  { %v339_v37 = vmul.f32 %v338_v35, %v299_v33 }
 0x185   :  { %v340_v38 = vadd.f32 %v339_v37, %v324_v36 }
 0x187   :  { %341 = vadd.xlane.f32.xlu0 %v340_v38 }
 0x1fa   :  { %v342_v39 = vpop.xlane.xlu0 %341 }
 0x1fb   :  { %v343_v40 = vrot.slane %v342_v39, 4 }
 0x1fd   :  { %v344_v41 = vadd.f32 %v343_v40, %v342_v39 }
 0x1ff   :  { %v345_v42 = vrot.slane %v344_v41, 2 }
 0x201   :  { %v346_v43 = vadd.f32 %v345_v42, %v344_v41 }
 0x203   :  { %v347_v44 = vrot.slane %v346_v43, 1 }
 0x205   :  { %v348_v45 = vadd.f32 %v347_v44, %v346_v43 }
 0x207   :  { %417 = vpush %v348_v45 }
 0x238   :  { %s418_s12 = spop %417 }
 0x239   :  { %v351_v46 = vstv %s418_s12 }
 0x23a   :  { %353 = vst [vmem:[#allocation10] sm:$0xff] %v351_v46 }
 0x23b   :  { %364 = dma.vmem_to_hbm [thread:$0]  %s360_s3, 128, %s362_s11, [#allocation4]  }
 0x23c   :  { %556 = dma.done.wait [#allocation4], 128  }
 0x23d   :  { %557 = vsyncadd [#allocation4], 4294967168 }
 0x23e   :  { %369 = vsyncpa [#allocation3], 1 }
 0x23f   :  { %370 = vsyncpa [#allocation6], 1 }
 0x240   :  { %371 = vsyncpa [#allocation9], 1 }
 0x241   :  { %372 = vsyncpa [#allocation4], 1 }

</bundles_post_ra>
